<compile_context>
chip_gen: v6e
topology: v6e:2x2x1
jax: 0.10.0
libtpu: 0.0.40
codegen_flags: <defaults>
</compile_context>

<pallas_src>
import functools

import jax
import jax.numpy as jnp
from jax import lax
from jax.experimental import pallas as pl
from jax.experimental.pallas import tpu as pltpu


def _round_up(x: int, m: int) -> int:
    return (x + m - 1) // m * m


def _scatter_add_kernel(src_ref, dst_ref, xT_ref, out_ref, *, tile_out, chunk):
    """Grid: (output-row tile t [parallel], edge chunk c [arbitrary/reduction])."""
    t = pl.program_id(0)
    c = pl.program_id(1)

    # Zero the resident output tile on the first reduction step.
    @pl.when(c == 0)
    def _():
        out_ref[...] = jnp.zeros_like(out_ref)

    # Lane-dense (1, chunk) int32 index vectors for this chunk.
    src = src_ref[pl.ds(c, 1), :]
    dst = dst_ref[pl.ds(c, 1), :]

    n_nodes = xT_ref.shape[1]

    # --- gather stage (MXU): gathered_T[D, chunk] = x^T @ onehot(src) -------
    node_ids = lax.broadcasted_iota(jnp.int32, (n_nodes, chunk), 0)
    onehot_src_t = (node_ids == src).astype(jnp.float32)          # (N, chunk)
    gathered_t = jnp.dot(
        xT_ref[...], onehot_src_t,
        preferred_element_type=jnp.float32,
        precision=lax.Precision.HIGHEST,
    )                                                             # (D, chunk)

    # --- scatter stage (MXU): out += onehot(dst) @ gathered_T^T -------------
    # Padded edges have dst == -1 and never match a row id -> contribute 0.
    row_ids = lax.broadcasted_iota(jnp.int32, (tile_out, chunk), 0) + t * tile_out
    onehot_dst = (row_ids == dst).astype(jnp.float32)             # (tile_out, chunk)
    out_ref[...] += lax.dot_general(
        onehot_dst, gathered_t,
        dimension_numbers=(((1,), (1,)), ((), ())),               # contract over chunk
        preferred_element_type=jnp.float32,
        precision=lax.Precision.HIGHEST,
    )                                                             # (tile_out, D)


def gather_scatter_add(edge_index, x, num_out, *, tile_out=128, chunk=2048):
    """edge_index: int[2, E]; x: float32[N, D] -> float32[num_out, D]."""
    src = edge_index[0].astype(jnp.int32)
    dst = edge_index[1].astype(jnp.int32)
    (E,) = src.shape
    N, D = x.shape

    # Clamp tile sizes for small problems; keep them (8,128)-friendly.
    chunk = min(chunk, _round_up(E, 128))
    tile_out = min(tile_out, _round_up(num_out, 8))

    E_pad = _round_up(E, chunk)
    num_chunks = E_pad // chunk
    out_pad = _round_up(num_out, tile_out)
    num_tiles = out_pad // tile_out

    if E_pad != E:
        pad = E_pad - E
        src = jnp.concatenate([src, jnp.zeros((pad,), jnp.int32)])
        dst = jnp.concatenate([dst, jnp.full((pad,), -1, jnp.int32)])
    src2 = src.reshape(num_chunks, chunk)
    dst2 = dst.reshape(num_chunks, chunk)

    # Node axis on lanes so the gather one-hot needs no in-kernel transpose.
    xT = x.T  # (D, N)

    kernel = functools.partial(_scatter_add_kernel, tile_out=tile_out, chunk=chunk)

    out = pl.pallas_call(
        kernel,
        out_shape=jax.ShapeDtypeStruct((out_pad, D), jnp.float32),
        grid=(num_tiles, num_chunks),
        in_specs=[
            # Edge indices stay resident in VMEM (full-array blocks).
            pl.BlockSpec((num_chunks, chunk), lambda t, c: (0, 0)),   # src
            pl.BlockSpec((num_chunks, chunk), lambda t, c: (0, 0)),   # dst
            pl.BlockSpec((D, N), lambda t, c: (0, 0)),                # x^T
        ],
        # Output tile resident across the chunk (reduction) axis.
        out_specs=pl.BlockSpec((tile_out, D), lambda t, c: (t, 0)),
        compiler_params=pltpu.CompilerParams(
            # Output tiles are independent -> parallel (megacore on v7x);
            # edge chunks are a reduction -> arbitrary.
            dimension_semantics=("parallel", "arbitrary"),
        ),
    )(src2, dst2, xT)

    return out[:num_out]


if __name__ == "__main__":
    # Small shapes consistent with the module:
    #   original: E=200000 edges, num_out=10000, D=32, N = arg1_1.shape[0]
    #   here:     E=256,          num_out=32,    D=32, N=64
    E, N, NUM_OUT, D = 256, 64, 32, 32

    key = jax.random.PRNGKey(0)
    k_src, k_dst, k_x = jax.random.split(key, 3)
    src = jax.random.randint(k_src, (E,), 0, N, dtype=jnp.int32)
    dst = jax.random.randint(k_dst, (E,), 0, NUM_OUT, dtype=jnp.int32)
    edge_index = jnp.stack([src, dst], axis=0)               # arg0_1 (int32)
    x = jax.random.normal(k_x, (N, D), dtype=jnp.float32)    # arg1_1

    out = gather_scatter_add(edge_index, x, NUM_OUT)
    out = jax.block_until_ready(out)

    # Pure-JAX reference of the fx-graph semantics.
    ref = jnp.zeros((NUM_OUT, D), jnp.float32).at[dst].add(x[src])
    assert out.shape == (NUM_OUT, D) and out.dtype == jnp.float32
    assert jnp.allclose(out, ref, atol=1e-4, rtol=1e-4), "Pallas kernel mismatch vs reference"

    print("KERNEL_OK")
</pallas_src>

<mosaic_0001>
module attributes {stable_mosaic.version = 11 : i64} {
  func.func @_scatter_add_kernel(%arg0: i32, %arg1: i32, %arg2: memref<1x256xi32, #tpu.memory_space<vmem>>, %arg3: memref<1x256xi32, #tpu.memory_space<vmem>>, %arg4: memref<32x64xf32, #tpu.memory_space<vmem>>, %arg5: memref<32x32xf32, #tpu.memory_space<vmem>>) attributes {dimension_semantics = [#tpu.dimension_semantics<parallel>, #tpu.dimension_semantics<arbitrary>], iteration_bounds = array<i64: 1, 1>, scalar_prefetch = 0 : i64, scratch_operands = 0 : i64, tpu.core_type = #tpu.core_type<tc>, window_params = [{pipeline_mode = #tpu.pipeline_mode<synchronous>, transform_indices = @transform_0, window_bounds = array<i64: 1, 256>}, {pipeline_mode = #tpu.pipeline_mode<synchronous>, transform_indices = @transform_1, window_bounds = array<i64: 1, 256>}, {pipeline_mode = #tpu.pipeline_mode<synchronous>, transform_indices = @transform_2, window_bounds = array<i64: 32, 64>}, {transform_indices = @transform_3, window_bounds = array<i64: 32, 32>}]} {
    %c0_i32 = arith.constant 0 : i32
    %0 = arith.cmpi eq, %arg1, %c0_i32 : i32
    %1 = arith.extui %0 : i1 to i32
    %c0_i32_0 = arith.constant 0 : i32
    %2 = arith.cmpi ne, %1, %c0_i32_0 : i32
    scf.if %2 {
      %cst_9 = arith.constant 0.000000e+00 : f32
      %26 = vector.broadcast %cst_9 : f32 to vector<32x32xf32>
      %c0_10 = arith.constant 0 : index
      %c0_11 = arith.constant 0 : index
      %27 = vector.load %arg5[%c0_10, %c0_11] : memref<32x32xf32, #tpu.memory_space<vmem>>, vector<32x32xf32>
      tpu.vector_store %arg5[%c0_10, %c0_11], %26 {strides = array<i32>} : memref<32x32xf32, #tpu.memory_space<vmem>>, vector<32x32xf32>,
    } else {
    }
    %3 = arith.index_cast %arg1 : i32 to index
    %c0 = arith.constant 0 : index
    %4 = vector.load %arg2[%3, %c0] : memref<1x256xi32, #tpu.memory_space<vmem>>, vector<1x256xi32>
    %5 = arith.index_cast %arg1 : i32 to index
    %c0_1 = arith.constant 0 : index
    %6 = vector.load %arg3[%5, %c0_1] : memref<1x256xi32, #tpu.memory_space<vmem>>, vector<1x256xi32>
    %7 = tpu.iota {dimensions = array<i32: 0>} : vector<64x256xi32>
    %8 = vector.broadcast %4 : vector<1x256xi32> to vector<64x256xi32>
    %9 = arith.cmpi eq, %7, %8 : vector<64x256xi32>
    %10 = arith.extui %9 : vector<64x256xi1> to vector<64x256xi32>
    %11 = arith.sitofp %10 : vector<64x256xi32> to vector<64x256xf32>
    %c0_2 = arith.constant 0 : index
    %c0_3 = arith.constant 0 : index
    %12 = vector.load %arg4[%c0_2, %c0_3] : memref<32x64xf32, #tpu.memory_space<vmem>>, vector<32x64xf32>
    %cst = arith.constant dense<0.000000e+00> : vector<32x256xf32>
    %13 = tpu.matmul %12, %11, %cst {dimension_numbers = #tpu.dot_dimension_numbers<[1], [0], [0], [1], [0, 0, 1, 1], [], []>, precision = #tpu.contract_precision<fp32>} : vector<32x64xf32>, vector<64x256xf32>, vector<32x256xf32> -> vector<32x256xf32>
    %14 = tpu.iota {dimensions = array<i32: 0>} : vector<32x256xi32>
    %c32_i32 = arith.constant 32 : i32
    %15 = arith.muli %arg0, %c32_i32 : i32
    %16 = vector.broadcast %15 : i32 to vector<32x256xi32>
    %17 = arith.addi %14, %16 : vector<32x256xi32>
    %18 = vector.broadcast %6 : vector<1x256xi32> to vector<32x256xi32>
    %19 = arith.cmpi eq, %17, %18 : vector<32x256xi32>
    %20 = arith.extui %19 : vector<32x256xi1> to vector<32x256xi32>
    %21 = arith.sitofp %20 : vector<32x256xi32> to vector<32x256xf32>
    %c0_4 = arith.constant 0 : index
    %c0_5 = arith.constant 0 : index
    %22 = vector.load %arg5[%c0_4, %c0_5] : memref<32x32xf32, #tpu.memory_space<vmem>>, vector<32x32xf32>
    %cst_6 = arith.constant dense<0.000000e+00> : vector<32x32xf32>
    %23 = tpu.matmul %21, %13, %cst_6 {dimension_numbers = #tpu.dot_dimension_numbers<[1], [1], [0], [0], [0, 0, 1, 0], [], []>, precision = #tpu.contract_precision<fp32>} : vector<32x256xf32>, vector<32x256xf32>, vector<32x32xf32> -> vector<32x32xf32>
    %24 = arith.addf %22, %23 : vector<32x32xf32>
    %c0_7 = arith.constant 0 : index
    %c0_8 = arith.constant 0 : index
    %25 = vector.load %arg5[%c0_7, %c0_8] : memref<32x32xf32, #tpu.memory_space<vmem>>, vector<32x32xf32>
    tpu.vector_store %arg5[%c0_7, %c0_8], %24 {strides = array<i32>} : memref<32x32xf32, #tpu.memory_space<vmem>>, vector<32x32xf32>,
    return
  }
  func.func @transform_0(%arg0: i32, %arg1: i32) -> (i32, i32) {
    %c0_i32 = arith.constant 0 : i32
    %c0_i32_0 = arith.constant 0 : i32
    %c0_i32_1 = arith.constant 0 : i32
    return %c0_i32, %c0_i32_0 : i32, i32
  }
  func.func @transform_1(%arg0: i32, %arg1: i32) -> (i32, i32) {
    %c0_i32 = arith.constant 0 : i32
    %c0_i32_0 = arith.constant 0 : i32
    %c0_i32_1 = arith.constant 0 : i32
    return %c0_i32, %c0_i32_0 : i32, i32
  }
  func.func @transform_2(%arg0: i32, %arg1: i32) -> (i32, i32) {
    %c0_i32 = arith.constant 0 : i32
    %c0_i32_0 = arith.constant 0 : i32
    %c0_i32_1 = arith.constant 0 : i32
    return %c0_i32, %c0_i32_0 : i32, i32
  }
  func.func @transform_3(%arg0: i32, %arg1: i32) -> (i32, i32) {
    %c0_i32 = arith.constant 0 : i32
    %c0_i32_0 = arith.constant 0 : i32
    return %arg0, %c0_i32 : i32, i32
  }
}

</mosaic_0001>

<bundles_post_ra>
// kernel: tpu_custom_call.1
= control target key start
LH: loop header
LB: loop body
LE: loop exit
PB: predicated region body
PF: predicated region fallthrough
CT: control target
= control target key end

     0   :  { %8 = vsyncpa [#allocation3], 0  ;;  %s2908_s0 = inlined_call_operand.hbm [shape: s32[1,256], index: 0, kind: input, shape index: {}]   ;;  %s2909_s1 = inlined_call_operand.hbm [shape: s32[1,256], index: 1, kind: input, shape index: {}]   ;;  %s2910_s2 = inlined_call_operand.hbm [shape: f32[32,64], index: 2, kind: input, shape index: {}]   ;;  %s2911_s3 = inlined_call_operand.hbm [shape: f32[32,32], index: 3, kind: output, shape index: {}]  }
   0x1   :  { %9 = vsyncpa [#allocation6], 0 }
   0x2   :  { %10 = vsyncpa [#allocation4], 0  ;;  %s1919_s12 = smov [#allocation5]   ;;  %s1920_s14 = smov [#allocation2]  }
   0x3   :  { %s27_s13 = sshll.u32 %s1919_s12, 4  ;;  %s17_s15 = sshll.u32 %s1920_s14, 4  ;;  %s28_s13 = int_to_ptr.vmem [resolvable:$true] %s27_s13  ;;  %s18_s15 = int_to_ptr.vmem [resolvable:$true] %s17_s15 }
   0x4   :  { %s1841_s16 = scalar_lea.vmem %s28_s13, 32  ;;  %p1846_p1 = scmp.lt.s32.totalorder %s28_s13, %s28_s13 }
   0x5   :  { %p1842_p0 = scmp.ne.s32.totalorder %s28_s13, %s1841_s16  ;;  %p1847_p2 = scmp.lt.s32.totalorder %s1841_s16, %s1841_s16 }
   0x7   :  { %p1848_p3 = por %p1847_p2, %p1846_p1 }
   0x9   :  { %p1849_p4 = pnand %p1848_p3, %p1842_p0 }
   0xb   :  { %1852 = shalt.err (!%p1849_p4)
}
   0xc   :  { %30 = dma.hbm_to_vmem [thread:$0]  %s2909_s1, 32, %s28_s13, [#allocation6]  }
   0xd   :  { %s1861_s19 = scalar_lea.vmem %s18_s15, 32  ;;  %p1866_p6 = scmp.lt.s32.totalorder %s18_s15, %s18_s15 }
   0xe   :  { %p1862_p5 = scmp.ne.s32.totalorder %s18_s15, %s1861_s19  ;;  %p1867_p7 = scmp.lt.s32.totalorder %s1861_s19, %s1861_s19 }
  0x10   :  { %p1868_p8 = por %p1867_p7, %p1866_p6 }
  0x12   :  { %p1869_p9 = pnand %p1868_p8, %p1862_p5 }
  0x14   :  { %1872 = shalt.err (!%p1869_p9)
}
  0x15   :  { %20 = dma.hbm_to_vmem [thread:$0]  %s2908_s0, 32, %s18_s15, [#allocation3]  }
  0x16   :  { %s1921_s22 = smov [#allocation7]  }
  0x17   :  { %s36_s23 = sshll.u32 %s1921_s22, 4  ;;  %s37_s23 = int_to_ptr.vmem [resolvable:$true] %s36_s23 }
  0x18   :  { %s1881_s24 = scalar_lea.vmem %s37_s23, 512  ;;  %p1886_p11 = scmp.lt.s32.totalorder %s37_s23, %s37_s23 }
  0x19   :  { %p1882_p10 = scmp.ne.s32.totalorder %s37_s23, %s1881_s24  ;;  %p1887_p12 = scmp.lt.s32.totalorder %s1881_s24, %s1881_s24 }
  0x1b   :  { %p1888_p13 = por %p1887_p12, %p1886_p11 }
  0x1d   :  { %p1889_p0 = pnand %p1888_p13, %p1882_p10 }
  0x1f   :  { %1892 = shalt.err (!%p1889_p0)
}
  0x20   :  { %s1922_s1 = smov 128   ;;  %s1923_s25 = smov 8  }
  0x21   :  { %42 = dma.hbm_to_vmem [thread:$0]  %s2910_s2, 512, %s37_s23, [#allocation6], %s1922_s1, %s1922_s1, %s1923_s25  }
  0x22   :  { %1913 = dma.done.wait [#allocation3], 32  }
  0x23   :  { %1914 = vsyncadd [#allocation3], 4294967264 }
  0x24   :  { %1915 = dma.done.wait [#allocation6], 544  }
  0x25   :  { %1916 = vsyncadd [#allocation6], 4294966752  ;;  %v66_v0 = vlaneseq  ;;  %v1924_v1 = vmov 0.0   ;;  %vm135_vm0 = vcmask 523264   ;;  %v63_v10 = vld [vmem:[#allocation2] sm:$0x3] }
  0x26   :  { %228 = vmatprep.mubr.f32.mxu0 %v1924_v1  ;;  %417 = vmatprep.mubr.f32.mxu1 %v1924_v1  ;;  %v131_v13 = vld [vmem:[#allocation7] sm:$0xff]  ;;  %v132_v14 = vld [vmem:[#allocation7 + $0x8] sm:$0xff]  ;;  %v133_v19 = vld [vmem:[#allocation7 + $0x10] sm:$0xff]  ;;  %v2917_v25 = vmov 1.0   ;;  %s1926_s0 = smov [#allocation8]  }
  0x27   :  { %v1961_v2 = vshrl.u32 %v66_v0, 7  ;;  %v1995_v17 = vsel %vm135_vm0, %v131_v13, 0  ;;  %v1998_v18 = vsel %vm135_vm0, %v132_v14, 0  ;;  %v134_v20 = vld [vmem:[#allocation7 + $0x18] sm:$0xff]  ;;  %v2007_v23 = vsel %vm135_vm0, %v133_v19, 0  ;;  %s1716_s2 = sshll.u32 %s1926_s0, 4  ;;  %s1717_s2 = int_to_ptr.vmem [resolvable:$true] %s1716_s2 }
  0x28   :  { %v2001_v21 = vand.u32 4294901760, %v1995_v17  ;;  %v2004_v22 = vand.u32 4294901760, %v1998_v18  ;;  %v2010_v24 = vsel %vm135_vm0, %v134_v20, 0  ;;  %s1893_s28 = scalar_lea.vmem %s1717_s2, 512  ;;  %p1898_p2 = scmp.lt.s32.totalorder %s1717_s2, %s1717_s2 }
  0x29   :  { %v2913_v3 = vsub.s32 1, %v1961_v2  ;;  %v2912_v4 = vsub.s32 0, %v1961_v2  ;;  %v1966_v5 = vadd.s32 56, %v1961_v2  ;;  %v1969_v6 = vadd.s32 48, %v1961_v2  ;;  %p1894_p1 = scmp.ne.s32.totalorder %s1717_s2, %s1893_s28  ;;  %p1899_p3 = scmp.lt.s32.totalorder %s1893_s28, %s1893_s28 }
  0x2a   :  { %v1972_v7 = vadd.s32 40, %v1961_v2  ;;  %v1975_v8 = vadd.s32 32, %v1961_v2  ;;  %v1978_v9 = vadd.s32 24, %v1961_v2  ;;  %v1981_v11 = vadd.s32 16, %v1961_v2 }
  0x2b   :  { %v1984_v12 = vadd.s32 8, %v1961_v2  ;;  %v1988_v15 = vrot.slane %v63_v10, %v2913_v3  ;;  %v1992_v16 = vrot.slane %v63_v10, %v2912_v4  ;;  %p1900_p4 = por %p1899_p3, %p1898_p2 }
  0x2d   :  { %vm98_vm1 = vcmp.eq.s32.totalorder %v1966_v5, %v1988_v15  ;;  %vm97_vm2 = vcmp.eq.s32.totalorder %v1966_v5, %v1992_v16  ;;  %vm96_vm3 = vcmp.eq.s32.totalorder %v1969_v6, %v1988_v15  ;;  %vm95_vm4 = vcmp.eq.s32.totalorder %v1969_v6, %v1992_v16  ;;  %v65_v6 = vld [vmem:[#allocation5] sm:$0x3]  ;;  %p1901_p5 = pnand %p1900_p4, %p1894_p1 }
  0x2e   :  { %1745 = vmatprep.subr.msk.mxu0 %vm98_vm1, %v2917_v25  ;;  %v1742_v26 = vsel %vm96_vm3, 1.0, %v1924_v1  ;;  %v1741_v27 = vsel %vm95_vm4, 1.0, %v1924_v1  ;;  %vm94_vm5 = vcmp.eq.s32.totalorder %v1972_v7, %v1988_v15  ;;  %vm93_vm6 = vcmp.eq.s32.totalorder %v1972_v7, %v1992_v16 }
  0x2f   :  { %1746 = vmatpush1.msk.msra.mxu0 %vm97_vm2, %v2917_v25  ;;  %v2040_v28 = vsub.f32 %v1742_v26, %v1742_v26  ;;  %v2042_v29 = vsub.f32 %v1741_v27, %v1741_v27  ;;  %v1740_v30 = vsel %vm94_vm5, 1.0, %v1924_v1  ;;  %v1739_v31 = vsel %vm93_vm6, 1.0, %v1924_v1 }
  0x30   :  { %1747 = vmatprep.subr.msk.mxu0 %vm96_vm3, %v2917_v25  ;;  %v2056_v32 = vsub.f32 %v1740_v30, %v1740_v30  ;;  %v2058_v33 = vsub.f32 %v1739_v31, %v1739_v31  ;;  %vm92_vm7 = vcmp.eq.s32.totalorder %v1975_v8, %v1988_v15  ;;  %vm91_vm8 = vcmp.eq.s32.totalorder %v1975_v8, %v1992_v16 }
  0x31   :  { %1748 = vmatpush1.msk.msra.mxu0 %vm95_vm4, %v2917_v25  ;;  %v1738_v34 = vsel %vm92_vm7, 1.0, %v1924_v1  ;;  %v1737_v35 = vsel %vm91_vm8, 1.0, %v1924_v1  ;;  %vm90_vm9 = vcmp.eq.s32.totalorder %v1978_v9, %v1988_v15  ;;  %vm89_vm10 = vcmp.eq.s32.totalorder %v1978_v9, %v1992_v16 }
  0x32   :  { %1749 = vmatprep.subr.msk.mxu0 %vm94_vm5, %v2917_v25  ;;  %v2084_v36 = vsub.f32 %v1738_v34, %v1738_v34  ;;  %v2086_v37 = vsub.f32 %v1737_v35, %v1737_v35  ;;  %v1736_v38 = vsel %vm90_vm9, 1.0, %v1924_v1  ;;  %v1735_v39 = vsel %vm89_vm10, 1.0, %v1924_v1 }
  0x33   :  { %1750 = vmatpush1.msk.msra.mxu0 %vm93_vm6, %v2917_v25  ;;  %v2100_v40 = vsub.f32 %v1736_v38, %v1736_v38  ;;  %v2102_v41 = vsub.f32 %v1735_v39, %v1735_v39  ;;  %v1744_v42 = vsel %vm98_vm1, 1.0, %v1924_v1  ;;  %vm88_vm11 = vcmp.eq.s32.totalorder %v1981_v11, %v1988_v15 }
  0x34   :  { %1751 = vmatprep.subr.msk.mxu0 %vm92_vm7, %v2917_v25  ;;  %v2114_v43 = vsub.f32 %v1744_v42, %v1744_v42  ;;  %v1734_v44 = vsel %vm88_vm11, 1.0, %v1924_v1  ;;  %v1743_v45 = vsel %vm97_vm2, 1.0, %v1924_v1  ;;  %vm87_vm12 = vcmp.eq.s32.totalorder %v1981_v11, %v1992_v16 }
  0x35   :  { %1752 = vmatpush1.msk.msra.mxu0 %vm91_vm8, %v2917_v25  ;;  %v2130_v46 = vsub.f32 %v1734_v44, %v1734_v44  ;;  %v2132_v47 = vsub.f32 %v1743_v45, %v1743_v45  ;;  %v1733_v48 = vsel %vm87_vm12, 1.0, %v1924_v1  ;;  %v303_v49 = vand.u32 4294901760, %v2040_v28 }
  0x36   :  { %1753 = vmatprep.subr.msk.mxu0 %vm90_vm9, %v2917_v25  ;;  %v291_v50 = vand.u32 4294901760, %v2114_v43  ;;  %v2144_v51 = vsub.f32 %v1733_v48, %v1733_v48  ;;  %vm86_vm13 = vcmp.eq.s32.totalorder %v1984_v12, %v1988_v15  ;;  %v309_v52 = vand.u32 4294901760, %v2042_v29 }
  0x37   :  { %1754 = vmatpush1.msk.msra.mxu0 %vm89_vm10, %v2917_v25  ;;  %v297_v53 = vand.u32 4294901760, %v2132_v47  ;;  %v304_v54 = vsub.f32 %v2040_v28, %v303_v49  ;;  %v1732_v55 = vsel %vm86_vm13, 1.0, %v1924_v1  ;;  %vm85_vm14 = vcmp.eq.s32.totalorder %v1984_v12, %v1992_v16 }
  0x38   :  { %v292_v56 = vsub.f32 %v2114_v43, %v291_v50  ;;  %1755 = vmatprep.subr.msk.mxu0 %vm88_vm11, %v2917_v25  ;;  %v2170_v57 = vsub.f32 %v1732_v55, %v1732_v55  ;;  %v310_v58 = vsub.f32 %v2042_v29, %v309_v52  ;;  %v1731_v59 = vsel %vm85_vm14, 1.0, %v1924_v1 }
  0x39   :  { %v298_v60 = vsub.f32 %v2132_v47, %v297_v53  ;;  %1756 = vmatpush1.msk.msra.mxu0 %vm87_vm12, %v2917_v25  ;;  %v305_v61 = vand.u32 4294901760, %v304_v54  ;;  %v2186_v62 = vsub.f32 %v1731_v59, %v1731_v59  ;;  %v315_v63 = vand.u32 4294901760, %v2056_v32 }
  0x3a   :  { %v293_v0 = vand.u32 4294901760, %v292_v56  ;;  %1757 = vmatprep.subr.msk.mxu0 %vm86_vm13, %v2917_v25  ;;  %v311_v10 = vand.u32 4294901760, %v310_v58  ;;  %vm84_vm15 = vcmp.eq.s32.totalorder %v1961_v2, %v1988_v15  ;;  %v321_v13 = vand.u32 4294901760, %v2058_v33 }
  0x3b   :  { %v299_v14 = vand.u32 4294901760, %v298_v60  ;;  %1758 = vmatpush1.msk.msra.mxu0 %vm85_vm14, %v2917_v25  ;;  %v316_v19 = vsub.f32 %v2056_v32, %v315_v63  ;;  %v1730_v20 = vsel %vm84_vm15, 1.0, %v1924_v1  ;;  %vm83_vm0 = vcmp.eq.s32.totalorder %v1961_v2, %v1992_v16 }
  0x3c   :  { %294 = vmatprep.subr.mxu1 %v293_v0  ;;  %1759 = vmatprep.subr.msk.mxu0 %vm84_vm15, %v2917_v25  ;;  %v2213_v26 = vsub.f32 %v1730_v20, %v1730_v20  ;;  %v322_v27 = vsub.f32 %v2058_v33, %v321_v13  ;;  %v1729_v30 = vsel %vm83_vm0, 1.0, %v1924_v1  ;;  %v327_v31 = vand.u32 4294901760, %v2084_v36 }
  0x3d   :  { %300 = vmatpush1.msra.mxu1 %v299_v14  ;;  %v317_v34 = vand.u32 4294901760, %v316_v19  ;;  %1760 = vmatpush1.msk.msra.mxu0 %vm83_vm0, %v2917_v25  ;;  %v2227_v35 = vsub.f32 %v1729_v30, %v1729_v30  ;;  %v2231_v38 = vsub.f32 %v1995_v17, %v2001_v21  ;;  %v333_v39 = vand.u32 4294901760, %v2086_v37 }
  0x3e   :  { %306 = vmatprep.subr.mxu1 %v305_v61  ;;  %v323_v42 = vand.u32 4294901760, %v322_v27  ;;  %v328_v44 = vsub.f32 %v2084_v36, %v327_v31  ;;  %464 = vmatprep.subr.mxu0 %v2114_v43  ;;  %v339_v45 = vand.u32 4294901760, %v2100_v40  ;;  %v345_v48 = vand.u32 4294901760, %v2102_v41 }
  0x3f   :  { %312 = vmatpush1.msra.mxu1 %v311_v10  ;;  %v231_v54 = vand.u32 4294901760, %v2231_v38  ;;  %v334_v17 = vsub.f32 %v2086_v37, %v333_v39  ;;  %v351_v55 = vand.u32 4294901760, %v2130_v46  ;;  %v2247_v56 = vsub.f32 %v1998_v18, %v2004_v22 }
  0x40   :  { %318 = vmatprep.subr.mxu1 %v317_v34  ;;  %v329_v58 = vand.u32 4294901760, %v328_v44  ;;  %v340_v59 = vsub.f32 %v2100_v40, %v339_v45  ;;  %v346_v60 = vsub.f32 %v2102_v41, %v345_v48  ;;  %v357_v61 = vand.u32 4294901760, %v2144_v51 }
  0x41   :  { %324 = vmatpush1.msra.mxu1 %v323_v42  ;;  %v232_v0 = vsub.f32 %v2231_v38, %v231_v54  ;;  %v335_v10 = vand.u32 4294901760, %v334_v17  ;;  %v352_v18 = vsub.f32 %v2130_v46, %v351_v55  ;;  %v242_v14 = vand.u32 4294901760, %v2247_v56 }
  0x42   :  { %330 = vmatprep.subr.mxu1 %v329_v58  ;;  %v341_v19 = vand.u32 4294901760, %v340_v59  ;;  %v347_v20 = vand.u32 4294901760, %v346_v60  ;;  %v358_v27 = vsub.f32 %v2144_v51, %v357_v61  ;;  %v363_v30 = vand.u32 4294901760, %v2170_v57 }
  0x43   :  { %v233_v34 = vand.u32 4294901760, %v232_v0  ;;  %336 = vmatpush1.msra.mxu1 %v335_v10  ;;  %v353_v42 = vand.u32 4294901760, %v352_v18  ;;  %v243_v44 = vsub.f32 %v2247_v56, %v242_v14  ;;  %v2914_v17 = vand.u32 4294901760, %v2186_v62 }
  0x44   :  { %342 = vmatprep.subr.mxu1 %v341_v19  ;;  %v359_v4 = vand.u32 4294901760, %v358_v27  ;;  %v364_v58 = vsub.f32 %v2170_v57, %v363_v30  ;;  %v2915_v59 = vand.u32 4294901760, %v2213_v26  ;;  %v2276_v60 = vand.u32 4294901760, %v2007_v23 }
  0x45   :  { %234 = vmatmul.mubr.f32.vlgmr.msra.gmra.mxu0 %v233_v34  ;;  %348 = vmatpush1.msra.mxu1 %v347_v20  ;;  %v244_v0 = vand.u32 4294901760, %v243_v44  ;;  %v370_v10 = vsub.f32 %v2186_v62, %v2914_v17  ;;  %v381_v18 = vand.u32 4294901760, %v2227_v35  ;;  %v2283_v19 = vand.u32 4294901760, %v2010_v24 }
  0x46   :  { %467 = vmatpush1.msra.mxu0 %v2132_v47  ;;  %239 = vmatprep.mubr.f32.mxu0 %v1924_v1  ;;  %v365_v27 = vand.u32 4294901760, %v364_v58  ;;  %v376_v34 = vsub.f32 %v2213_v26, %v2915_v59  ;;  %v2292_v20 = vsub.f32 %v2007_v23, %v2276_v60  ;;  %v2919_v5 = vand.u32 4294901760, %v2186_v62 }
  0x47   :  { %470 = vmatprep.subr.mxu0 %v2040_v28  ;;  %354 = vmatprep.subr.mxu1 %v353_v42  ;;  %v371_v44 = vand.u32 4294901760, %v370_v10  ;;  %v382_v3 = vsub.f32 %v2227_v35, %v381_v18  ;;  %v2300_v17 = vsub.f32 %v2010_v24, %v2283_v19  ;;  %v2920_v28 = vand.u32 4294901760, %v2213_v26 }
  0x48   :  { %473 = vmatpush1.msra.mxu0 %v2042_v29  ;;  %360 = vmatpush1.msra.mxu1 %v359_v4  ;;  %v377_v58 = vand.u32 4294901760, %v376_v34  ;;  %v253_v59 = vand.u32 4294901760, %v2292_v20  ;;  %v2921_v7 = vsub.s32 1, %v1961_v2  ;;  %v2922_v34 = vsub.s32 0, %v1961_v2 }
  0x49   :  { %245 = vmatmul.mubr.f32.gmra.mxu0 %v244_v0  ;;  %476 = vmatprep.subr.mxu0 %v2056_v32  ;;  %v383_v23 = vand.u32 4294901760, %v382_v3  ;;  %v264_v42 = vand.u32 4294901760, %v2300_v17 }
  0x4a   :  { %366 = vmatprep.subr.mxu1 %v365_v27  ;;  %479 = vmatpush1.msra.mxu0 %v2058_v33  ;;  %v254_v24 = vsub.f32 %v2292_v20, %v253_v59  ;;  %v2530_v8 = vrot.slane %v65_v6, %v2921_v7 }
  0x4b   :  { %372 = vmatpush1.msra.mxu1 %v371_v44  ;;  %482 = vmatprep.subr.mxu0 %v2084_v36  ;;  %v265_v4 = vsub.f32 %v2300_v17, %v264_v42 }
  0x4c   :  { %250 = vmatprep.mubr.f32.mxu0 %v1924_v1  ;;  %378 = vmatprep.subr.mxu1 %v377_v58  ;;  %v255_v3 = vand.u32 4294901760, %v254_v24 }
  0x4d   :  { %485 = vmatpush1.msra.mxu0 %v2086_v37  ;;  %384 = vmatpush1.msra.mxu1 %v383_v23  ;;  %v266_v0 = vand.u32 4294901760, %v265_v4 }
  0x4e   :  { %256 = vmatmul.mubr.f32.gmra.mxu0 %v255_v3  ;;  %488 = vmatprep.subr.mxu0 %v2100_v40 }
  0x4f   :  { %419 = vmatmul.mubr.f32.vlgmr.msra.gmra.mxu1 %v2001_v21  ;;  %491 = vmatpush1.msra.mxu0 %v2102_v41 }
  0x50   :  { %1761 = vmatprep.subr.msk.mxu1 %vm98_vm1, %v2917_v25  ;;  %494 = vmatprep.subr.mxu0 %v2130_v46 }
  0x51   :  { %1762 = vmatpush1.msk.msra.mxu1 %vm97_vm2, %v2917_v25  ;;  %261 = vmatprep.mubr.f32.mxu0 %v1924_v1 }
  0x52   :  { %497 = vmatpush1.msra.mxu0 %v2144_v51  ;;  %1763 = vmatprep.subr.msk.mxu1 %vm96_vm3, %v2917_v25 }
  0x53   :  { %267 = vmatmul.mubr.f32.gmra.mxu0 %v266_v0  ;;  %424 = vmatprep.mubr.f32.mxu1 %v1924_v1 }
  0x54   :  { %500 = vmatprep.subr.mxu0 %v2170_v57  ;;  %1764 = vmatpush1.msk.msra.mxu1 %vm95_vm4, %v2917_v25 }
  0x55   :  { %426 = vmatmul.mubr.f32.gmra.mxu1 %v2004_v22  ;;  %503 = vmatpush1.msra.mxu0 %v2186_v62 }
  0x56   :  { %1765 = vmatprep.subr.msk.mxu1 %vm94_vm5, %v2917_v25  ;;  %506 = vmatprep.subr.mxu0 %v2213_v26 }
  0x57   :  { %1766 = vmatpush1.msk.msra.mxu1 %vm93_vm6, %v2917_v25  ;;  %509 = vmatpush1.msra.mxu0 %v2227_v35 }
  0x58   :  { %542 = vmatprep.mubr.f32.mxu0 %v1924_v1  ;;  %1767 = vmatprep.subr.msk.mxu1 %vm92_vm7, %v2917_v25 }
  0x59   :  { %431 = vmatprep.mubr.f32.mxu1 %v1924_v1  ;;  %545 = vmatmul.mubr.f32.vlgmr.msra.gmra.mxu0 %v2231_v38 }
  0x5a   :  { %1768 = vmatpush1.msk.msra.mxu1 %vm91_vm8, %v2917_v25  ;;  %711 = vmatprep.subr.mxu0 %v291_v50 }
  0x5b   :  { %433 = vmatmul.mubr.f32.gmra.mxu1 %v2276_v60  ;;  %1769 = vmatprep.subr.msk.mxu1 %vm90_vm9, %v2917_v25 }
  0x5c   :  { %715 = vmatpush1.msra.mxu0 %v297_v53  ;;  %1770 = vmatpush1.msk.msra.mxu1 %vm89_vm10, %v2917_v25 }
  0x5d   :  { %719 = vmatprep.subr.mxu0 %v303_v49  ;;  %550 = vmatprep.mubr.f32.mxu0 %v1924_v1 }
  0x5e   :  { %1771 = vmatprep.subr.msk.mxu1 %vm88_vm11, %v2917_v25  ;;  %723 = vmatpush1.msra.mxu0 %v309_v52 }
  0x5f   :  { %438 = vmatprep.mubr.f32.mxu1 %v1924_v1  ;;  %553 = vmatmul.mubr.f32.gmra.mxu0 %v2247_v56 }
  0x60   :  { %1772 = vmatpush1.msk.msra.mxu1 %vm87_vm12, %v2917_v25  ;;  %727 = vmatprep.subr.mxu0 %v315_v63 }
  0x61   :  { %440 = vmatmul.mubr.f32.gmra.mxu1 %v2283_v19  ;;  %1773 = vmatprep.subr.msk.mxu1 %vm86_vm13, %v2917_v25 }
  0x62   :  { %731 = vmatpush1.msra.mxu0 %v321_v13  ;;  %1774 = vmatpush1.msk.msra.mxu1 %vm85_vm14, %v2917_v25 }
  0x63   :  { %735 = vmatprep.subr.mxu0 %v327_v31  ;;  %558 = vmatprep.mubr.f32.mxu0 %v1924_v1 }
  0x64   :  { %1775 = vmatprep.subr.msk.mxu1 %vm84_vm15, %v2917_v25  ;;  %739 = vmatpush1.msra.mxu0 %v333_v39 }
  0x65   :  { %561 = vmatmul.mubr.f32.gmra.mxu0 %v2292_v20  ;;  %1776 = vmatpush1.msk.msra.mxu1 %vm83_vm0, %v2917_v25  ;;  %v2562_v20 = vrot.slane %v65_v6, %v2922_v34 }
  0x66   :  { %655 = vmatprep.mubr.f32.mxu1 %v1924_v1  ;;  %743 = vmatprep.subr.mxu0 %v339_v45 }
  0x67   :  { %659 = vmatmul.mubr.f32.vlgmr.msra.gmra.mxu1 %v231_v54  ;;  %747 = vmatpush1.msra.mxu0 %v345_v48 }
  0x68   :  { %1777 = vmatprep.subr.msk.mxu1 %vm98_vm1, %v2917_v25  ;;  %751 = vmatprep.subr.mxu0 %v351_v55  ;;  %vm957_vm1 = vcmp.eq.s32.totalorder %v1961_v2, %v2530_v8 }
  0x69   :  { %1778 = vmatpush1.msk.msra.mxu1 %vm97_vm2, %v2917_v25  ;;  %566 = vmatprep.mubr.f32.mxu0 %v1924_v1  ;;  %v1794_v15 = vsel %vm957_vm1, 1.0, %v1924_v1  ;;  %vm956_vm2 = vcmp.eq.s32.totalorder %v1961_v2, %v2562_v20 }
  0x6a   :  { %755 = vmatpush1.msra.mxu0 %v357_v61  ;;  %1779 = vmatprep.subr.msk.mxu1 %vm96_vm3, %v2917_v25  ;;  %v2542_v16 = vsub.f32 %v1794_v15, %v1794_v15  ;;  %vm959_vm3 = vcmp.eq.s32.totalorder %v1984_v12, %v2530_v8 }
  0x6b   :  { %569 = vmatmul.mubr.f32.gmra.mxu0 %v2300_v17  ;;  %664 = vmatprep.mubr.f32.mxu1 %v1924_v1 }
  0x6c   :  { %759 = vmatprep.subr.mxu0 %v363_v30  ;;  %1780 = vmatpush1.msk.msra.mxu1 %vm95_vm4, %v2917_v25  ;;  %vm958_vm4 = vcmp.eq.s32.totalorder %v1984_v12, %v2562_v20 }
  0x6d   :  { %668 = vmatmul.mubr.f32.gmra.mxu1 %v242_v14  ;;  %763 = vmatpush1.msra.mxu0 %v2919_v5 }
  0x6e   :  { %1781 = vmatprep.subr.msk.mxu1 %vm94_vm5, %v2917_v25  ;;  %767 = vmatprep.subr.mxu0 %v2920_v28  ;;  %vm961_vm5 = vcmp.eq.s32.totalorder %v1981_v11, %v2530_v8 }
  0x6f   :  { %1782 = vmatpush1.msk.msra.mxu1 %vm93_vm6, %v2917_v25  ;;  %771 = vmatpush1.msra.mxu0 %v381_v18  ;;  %vm960_vm6 = vcmp.eq.s32.totalorder %v1981_v11, %v2562_v20 }
  0x70   :  { %804 = vmatprep.mubr.f32.mxu0 %v1924_v1  ;;  %1783 = vmatprep.subr.msk.mxu1 %vm92_vm7, %v2917_v25  ;;  %vm963_vm7 = vcmp.eq.s32.totalorder %v1978_v9, %v2530_v8 }
  0x71   :  { %673 = vmatprep.mubr.f32.mxu1 %v1924_v1  ;;  %806 = vmatmul.mubr.f32.vlgmr.msra.gmra.mxu0 %v2001_v21 }
  0x72   :  { %1784 = vmatpush1.msk.msra.mxu1 %vm91_vm8, %v2917_v25  ;;  %811 = vmatprep.mubr.f32.mxu0 %v1924_v1  ;;  %vm962_vm8 = vcmp.eq.s32.totalorder %v1978_v9, %v2562_v20 }
  0x73   :  { %677 = vmatmul.mubr.f32.gmra.mxu1 %v253_v59  ;;  %1785 = vmatprep.subr.msk.mxu1 %vm90_vm9, %v2917_v25  ;;  %vm56_vm9 = vcmask 261120  }
  0x74   :  { %1786 = vmatpush1.msk.msra.mxu1 %vm89_vm10, %v2917_v25  ;;  %682 = vmatprep.mubr.f32.mxu1 %v1924_v1  ;;  %57 = vst.msk [vmem:[#allocation8] sm:$0xff] %vm56_vm9, %v1924_v1  ;;  %58 = vst.msk [vmem:[#allocation8 + $0x8] sm:$0xff] %vm56_vm9, %v1924_v1 }
  0x75   :  { %1787 = vmatprep.subr.msk.mxu1 %vm88_vm11, %v2917_v25  ;;  %813 = vmatmul.mubr.f32.gmra.mxu0 %v2004_v22  ;;  %59 = vst.msk [vmem:[#allocation8 + $0x10] sm:$0xff] %vm56_vm9, %v1924_v1  ;;  %60 = vst.msk [vmem:[#allocation8 + $0x18] sm:$0xff] %vm56_vm9, %v1924_v1 }
  0x76   :  { %1788 = vmatpush1.msk.msra.mxu1 %vm87_vm12, %v2917_v25  ;;  %818 = vmatprep.mubr.f32.mxu0 %v1924_v1 }
  0x77   :  { %686 = vmatmul.mubr.f32.gmra.mxu1 %v264_v42  ;;  %1789 = vmatprep.subr.msk.mxu1 %vm86_vm13, %v2917_v25 }
  0x78   :  { %1790 = vmatpush1.msk.msra.mxu1 %vm85_vm14, %v2917_v25  ;;  %913 = vmatprep.mubr.f32.mxu1 %v1924_v1 }
  0x79   :  { %1791 = vmatprep.subr.msk.mxu1 %vm84_vm15, %v2917_v25  ;;  %820 = vmatmul.mubr.f32.gmra.mxu0 %v2276_v60 }
  0x7a   :  { %1792 = vmatpush1.msk.msra.mxu1 %vm83_vm0, %v2917_v25  ;;  %825 = vmatprep.mubr.f32.mxu0 %v1924_v1 }
  0x7b   :  { %915 = vmatmul.mubr.f32.vlgmr.msra.gmra.mxu1 %v2001_v21  ;;  %v2916_v21 = vand.u32 4294901760, %v2542_v16 }
  0x7c   :  { %920 = vmatprep.mubr.f32.mxu1 %v1924_v1 }
  0x7d   :  { %827 = vmatmul.mubr.f32.gmra.mxu0 %v2283_v19 }
  0x7f   :  { %922 = vmatmul.mubr.f32.gmra.mxu1 %v2004_v22  ;;  %v1059_v22 = vsub.f32 %v2542_v16, %v2916_v21 }
  0x80   :  { %927 = vmatprep.mubr.f32.mxu1 %v1924_v1 }
  0x81   :  { %v1060_v29 = vand.u32 4294901760, %v1059_v22 }
  0x83   :  { %929 = vmatmul.mubr.f32.gmra.mxu1 %v2276_v60  ;;  %1061 = vmatprep.mubr.f32.mxu0 %v1060_v29 }
  0x84   :  { %934 = vmatprep.mubr.f32.mxu1 %v1924_v1 }
  0x87   :  { %936 = vmatmul.mubr.f32.gmra.mxu1 %v2283_v19 }
  0x88   :  { %1801 = vmatprep.mubr.msk.f32.mxu1 %vm957_vm1, %v2917_v25 }
 0x105   :  { %v2548_v32 = vpop.f32.mrf.mxu0 }
 0x107   :  { %v237_v33 = vpop.f32.mrf.mxu0 }
 0x109   :  { %v246_v36 = vpop.f32.mrf.mxu0 }
 0x10b   :  { %v248_v37 = vpop.f32.mrf.mxu0 }
 0x10e   :  { %v257_v40 = vpop.f32.mrf.mxu0 }
 0x10f   :  { %v2550_v41 = vpop.f32.mrf.mxu1 }
 0x110   :  { %v259_v43 = vpop.f32.mrf.mxu0 }
 0x111   :  { %v422_v46 = vpop.f32.mrf.mxu1 }
 0x112   :  { %v423_v7 = vadd.f32 %v422_v46, %v237_v33  ;;  %v421_v46 = vadd.f32 %v2550_v41, %v2548_v32 }
 0x113   :  { %v268_v47 = vpop.f32.mrf.mxu0 }
 0x115   :  { %v427_v49 = vpop.f32.mrf.mxu1  ;;  %v270_v50 = vpop.f32.mrf.mxu0 }
 0x116   :  { %v428_v15 = vadd.f32 %v427_v49, %v246_v36 }
 0x117   :  { %v429_v51 = vpop.f32.mrf.mxu1 }
 0x118   :  { %v430_v42 = vadd.f32 %v429_v51, %v248_v37 }
 0x119   :  { %v2552_v52 = vpop.f32.mrf.mxu0 }
 0x11b   :  { %v434_v53 = vpop.f32.mrf.mxu1  ;;  %v548_v57 = vpop.f32.mrf.mxu0 }
 0x11c   :  { %v435_v44 = vadd.f32 %v434_v53, %v257_v40  ;;  %v549_v25 = vadd.f32 %v548_v57, %v423_v7 }
 0x11d   :  { %v436_v62 = vpop.f32.mrf.mxu1 }
 0x11e   :  { %v437_v24 = vadd.f32 %v436_v62, %v259_v43 }
 0x11f   :  { %v554_v63 = vpop.f32.mrf.mxu0 }
 0x120   :  { %v555_v37 = vadd.f32 %v554_v63, %v428_v15 }
 0x121   :  { %v441_v13 = vpop.f32.mrf.mxu1  ;;  %v556_v26 = vpop.f32.mrf.mxu0 }
 0x122   :  { %v442_v0 = vadd.f32 %v441_v13, %v268_v47  ;;  %v557_v5 = vadd.f32 %v556_v26, %v430_v42  ;;  %v1793_v47 = vsel %vm956_vm2, 1.0, %v1924_v1 }
 0x123   :  { %v443_v31 = vpop.f32.mrf.mxu1 }
 0x124   :  { %v444_v6 = vadd.f32 %v443_v31, %v270_v50 }
 0x125   :  { %v562_v35 = vpop.f32.mrf.mxu0 }
 0x126   :  { %v563_v4 = vadd.f32 %v562_v35, %v435_v44  ;;  %v2590_v44 = vsub.f32 %v1793_v47, %v1793_v47 }
 0x127   :  { %v2554_v38 = vpop.f32.mrf.mxu1  ;;  %v564_v39 = vpop.f32.mrf.mxu0 }
 0x128   :  { %v565_v28 = vadd.f32 %v564_v39, %v437_v24 }
 0x129   :  { %v662_v45 = vpop.f32.mrf.mxu1 }
 0x12a   :  { %v663_v49 = vadd.f32 %v662_v45, %v549_v25 }
 0x12b   :  { %v570_v48 = vpop.f32.mrf.mxu0 }
 0x12c   :  { %v571_v34 = vadd.f32 %v570_v48, %v442_v0 }
 0x12d   :  { %v669_v54 = vpop.f32.mrf.mxu1  ;;  %v572_v55 = vpop.f32.mrf.mxu0 }
 0x12e   :  { %v573_v62 = vadd.f32 %v572_v55, %v444_v6  ;;  %v670_v50 = vadd.f32 %v669_v54, %v555_v37  ;;  %v1798_v6 = vsel %vm961_vm5, 1.0, %v1924_v1 }
 0x12f   :  { %v671_v56 = vpop.f32.mrf.mxu1 }
 0x130   :  { %v672_v40 = vadd.f32 %v671_v56, %v557_v5  ;;  %v547_v56 = vadd.f32 %v2552_v52, %v421_v46 }
 0x131   :  { %v2556_v61 = vpop.f32.mrf.mxu0 }
 0x132   :  { %v661_v32 = vadd.f32 %v2554_v38, %v547_v56  ;;  %v1796_v38 = vsel %vm959_vm3, 1.0, %v1924_v1 }
 0x133   :  { %v678_v14 = vpop.f32.mrf.mxu1  ;;  %v809_v30 = vpop.f32.mrf.mxu0  ;;  %v2628_v15 = vsub.f32 %v1796_v38, %v1796_v38 }
 0x134   :  { %v679_v22 = vadd.f32 %v678_v14, %v563_v4  ;;  %v810_v14 = vadd.f32 %v809_v30, %v663_v49 }
 0x135   :  { %v680_v17 = vpop.f32.mrf.mxu1  ;;  %v814_v59 = vpop.f32.mrf.mxu0 }
 0x136   :  { %v681_v53 = vadd.f32 %v680_v17, %v565_v28  ;;  %v815_v17 = vadd.f32 %v814_v59, %v670_v50  ;;  %v2670_v50 = vsub.f32 %v1798_v6, %v1798_v6 }
 0x137   :  { %v687_v60 = vpop.f32.mrf.mxu1  ;;  %v816_v10 = vpop.f32.mrf.mxu0 }
 0x138   :  { %v688_v13 = vadd.f32 %v687_v60, %v571_v34  ;;  %v817_v33 = vadd.f32 %v816_v10, %v672_v40  ;;  %v1797_v34 = vsel %vm960_vm6, 1.0, %v1924_v1 }
 0x139   :  { %v689_v18 = vpop.f32.mrf.mxu1  ;;  %v821_v19 = vpop.f32.mrf.mxu0 }
 0x13a   :  { %v822_v43 = vadd.f32 %v821_v19, %v679_v22  ;;  %v690_v63 = vadd.f32 %v689_v18, %v573_v62  ;;  %v808_v19 = vadd.f32 %v2556_v61, %v661_v32  ;;  %v1088_v32 = vand.u32 4294901760, %v2670_v50 }
 0x13b   :  { %v2558_v27 = vpop.f32.mrf.mxu1  ;;  %v823_v58 = vpop.f32.mrf.mxu0 }
 0x13c   :  { %v824_v36 = vadd.f32 %v823_v58, %v681_v53  ;;  %v1795_v58 = vsel %vm958_vm4, 1.0, %v1924_v1  ;;  %v917_v61 = vadd.f32 %v2558_v27, %v808_v19  ;;  %v1064_v27 = vand.u32 4294901760, %v2590_v44 }
 0x13d   :  { %v918_v23 = vpop.f32.mrf.mxu1  ;;  %v828_v29 = vpop.f32.mrf.mxu0  ;;  %v2630_v22 = vsub.f32 %v1795_v58, %v1795_v58 }
 0x13e   :  { %v829_v35 = vadd.f32 %v828_v29, %v688_v13  ;;  %v919_v41 = vadd.f32 %v918_v23, %v810_v14  ;;  %v2642_v40 = vand.u32 4294901760, %v917_v61  ;;  %v1800_v14 = vsel %vm963_vm7, 1.0, %v1924_v1 }
 0x13f   :  { %v923_v3 = vpop.f32.mrf.mxu1  ;;  %v830_v26 = vpop.f32.mrf.mxu0  ;;  %v1079_v46 = vand.u32 4294901760, %v2630_v22 }
 0x140   :  { %v831_v60 = vadd.f32 %v830_v26, %v690_v63  ;;  %v2610_v24 = vand.u32 4294901760, %v919_v41  ;;  %v2672_v26 = vsub.f32 %v1797_v34, %v1797_v34 }
 0x141   :  { %v925_v21 = vpop.f32.mrf.mxu1 }
 0x142   :  { %v926_v39 = vadd.f32 %v925_v21, %v817_v33  ;;  %v924_v21 = vadd.f32 %v923_v3, %v815_v17  ;;  %v1065_v33 = vsub.f32 %v2590_v44, %v1064_v27  ;;  %v1799_v17 = vsel %vm962_vm8, 1.0, %v1924_v1 }
 0x143   :  { %v930_v51 = vpop.f32.mrf.mxu1  ;;  %v1094_v58 = vand.u32 4294901760, %v2672_v26 }
 0x144   :  { %v931_v31 = vadd.f32 %v930_v51, %v822_v43  ;;  %v2582_v54 = vand.u32 4294901760, %v926_v39  ;;  %v2612_v4 = vand.u32 4294901760, %v924_v21  ;;  %v2652_v51 = vsub.f32 %v919_v41, %v2610_v24 }
 0x145   :  { %v932_v57 = vpop.f32.mrf.mxu1 }
 0x146   :  { %v933_v48 = vadd.f32 %v932_v57, %v824_v36  ;;  %v2580_v45 = vand.u32 4294901760, %v931_v31  ;;  %v2618_v0 = vsub.f32 %v926_v39, %v2582_v54  ;;  %v2645_v53 = vsub.f32 %v924_v21, %v2612_v4 }
 0x147   :  { %v937_v55 = vpop.f32.mrf.mxu1  ;;  %v1073_v36 = vand.u32 4294901760, %v2628_v15  ;;  %v1179_v56 = vand.u32 4294901760, %v2652_v51 }
 0x148   :  { %v2575_v10 = vand.u32 4294901760, %v933_v48  ;;  %v938_v25 = vadd.f32 %v937_v55, %v829_v35  ;;  %v2615_v3 = vsub.f32 %v931_v31, %v2580_v45  ;;  %v1167_v13 = vand.u32 4294901760, %v2618_v0 }
 0x149   :  { %v939_v52 = vpop.f32.mrf.mxu1  ;;  %v2677_v31 = vsub.f32 %v917_v61, %v2642_v40  ;;  %v1173_v57 = vand.u32 4294901760, %v2645_v53  ;;  %v1066_v55 = vand.u32 4294901760, %v1065_v33  ;;  %v1180_v38 = vsub.f32 %v2652_v51, %v1179_v56 }
 0x14a   :  { %v2585_v30 = vsub.f32 %v933_v48, %v2575_v10  ;;  %v2587_v59 = vand.u32 4294901760, %v938_v25  ;;  %v940_v18 = vadd.f32 %v939_v52, %v831_v60  ;;  %v1161_v37 = vand.u32 4294901760, %v2615_v3 }
 0x14b   :  { %v1168_v48 = vsub.f32 %v2618_v0, %v1167_v13  ;;  %v1074_v60 = vsub.f32 %v2628_v15, %v1073_v36  ;;  %v1185_v41 = vand.u32 4294901760, %v2677_v31  ;;  %v1174_v21 = vsub.f32 %v2645_v53, %v1173_v57 }
 0x14c   :  { %v2601_v23 = vsub.f32 %v938_v25, %v2587_v59  ;;  %v2603_v42 = vand.u32 4294901760, %v940_v18  ;;  %v1155_v7 = vand.u32 4294901760, %v2585_v30  ;;  %v1162_v63 = vsub.f32 %v2615_v3, %v1161_v37 }
 0x14d   :  { %v1080_v25 = vsub.f32 %v2630_v22, %v1079_v46  ;;  %v1169_v19 = vand.u32 4294901760, %v1168_v48  ;;  %v2714_v61 = vsub.f32 %v1799_v17, %v1799_v17  ;;  %v1075_v6 = vand.u32 4294901760, %v1074_v60 }
 0x14e   :  { %v1149_v5 = vand.u32 4294901760, %v2601_v23  ;;  %v2622_v28 = vsub.f32 %v940_v18, %v2603_v42  ;;  %1009 = vmatprep.subr.mxu0 %v2603_v42  ;;  %v1156_v62 = vsub.f32 %v2585_v30, %v1155_v7  ;;  %v1163_v52 = vand.u32 4294901760, %v1162_v63 }
 0x14f   :  { %1011 = vmatpush1.xpose.msra.mxu0 %v2587_v59  ;;  %v2708_v18 = vsub.f32 %v1800_v14, %v1800_v14  ;;  %v1186_v34 = vsub.f32 %v2677_v31, %v1185_v41  ;;  %v1181_v33 = vand.u32 4294901760, %v1180_v38  ;;  %v1095_v63 = vsub.f32 %v2672_v26, %v1094_v58  ;;  %v980_v38 = vld [vmem:[#allocation8] sm:$0xff] }
 0x150   :  { %1013 = vmatprep.subr.mxu0 %v2575_v10  ;;  %v1143_v29 = vand.u32 4294901760, %v2622_v28  ;;  %v1150_v43 = vsub.f32 %v2601_v23, %v1149_v5  ;;  %v1157_v39 = vand.u32 4294901760, %v1156_v62 }
 0x151   :  { %v1103_v62 = vand.u32 4294901760, %v2708_v18  ;;  %v1096_v17 = vand.u32 4294901760, %v1095_v63 }
 0x152   :  { %v1144_v47 = vsub.f32 %v2622_v28, %v1143_v29  ;;  %v1151_v35 = vand.u32 4294901760, %v1150_v43  ;;  %v1175_v43 = vand.u32 4294901760, %v1174_v21 }
 0x153   :  { %1015 = vmatpush1.xpose.msra.mxu0 %v2580_v45  ;;  %v1104_v14 = vsub.f32 %v2708_v18, %v1103_v62 }
 0x154   :  { %1017 = vmatprep.subr.mxu0 %v2582_v54  ;;  %v1145_v49 = vand.u32 4294901760, %v1144_v47  ;;  %v1089_v47 = vsub.f32 %v2670_v50, %v1088_v32 }
 0x155   :  { %v1105_v60 = vand.u32 4294901760, %v1104_v14 }
 0x156   :  { %1146 = vmatprep.subr.mxu1 %v1145_v49  ;;  %v1081_v49 = vand.u32 4294901760, %v1080_v25  ;;  %v1090_v48 = vand.u32 4294901760, %v1089_v47  ;;  %v2923_v25 = vmov 1.0  }
 0x157   :  { %1019 = vmatpush1.xpose.msra.mxu0 %v2612_v4  ;;  %1152 = vmatpush1.xpose.msra.mxu1 %v1151_v35  ;;  %v1109_v35 = vand.u32 4294901760, %v2714_v61 }
 0x158   :  { %1021 = vmatprep.subr.mxu0 %v2610_v24  ;;  %1158 = vmatprep.subr.mxu1 %v1157_v39  ;;  %v1187_v39 = vand.u32 4294901760, %v1186_v34 }
 0x15b   :  { %1023 = vmatpush1.xpose.msra.mxu0 %v2642_v40  ;;  %1164 = vmatpush1.xpose.msra.mxu1 %v1163_v52 }
 0x15c   :  { %1170 = vmatprep.subr.mxu1 %v1169_v19  ;;  %1276 = vmatprep.subr.mxu0 %v2622_v28 }
 0x15e   :  { %1067 = vmatmul.mubr.f32.vlgmr.msra.gmra.mxu0 %v1066_v55  ;;  %v1110_v55 = vsub.f32 %v2714_v61, %v1109_v35 }
 0x15f   :  { %1176 = vmatpush1.xpose.msra.mxu1 %v1175_v43  ;;  %1279 = vmatpush1.xpose.msra.mxu0 %v2601_v23 }
 0x160   :  { %1182 = vmatprep.subr.mxu1 %v1181_v33  ;;  %1282 = vmatprep.subr.mxu0 %v2585_v30  ;;  %v1111_v21 = vand.u32 4294901760, %v1110_v55  ;;  %v2924_v30 = vand.u32 4294901760, %v2542_v16 }
 0x161   :  { %1076 = vmatprep.mubr.f32.mxu0 %v1075_v6 }
 0x162   :  { %1082 = vmatmul.mubr.f32.gmra.mxu0 %v1081_v49 }
 0x163   :  { %1188 = vmatpush1.xpose.msra.mxu1 %v1187_v39  ;;  %1285 = vmatpush1.xpose.msra.mxu0 %v2615_v3 }
 0x164   :  { %1288 = vmatprep.subr.mxu0 %v2618_v0  ;;  %1392 = vmatprep.subr.mxu1 %v2603_v42 }
 0x165   :  { %1091 = vmatprep.mubr.f32.mxu0 %v1090_v48 }
 0x166   :  { %1097 = vmatmul.mubr.f32.gmra.mxu0 %v1096_v17  ;;  %1802 = vmatmul.mubr.msk.f32.vlgmr.msra.gmra.mxu1 %vm956_vm2, %v2923_v25 }
 0x167   :  { %1291 = vmatpush1.xpose.msra.mxu0 %v2645_v53  ;;  %1394 = vmatpush1.xpose.msra.mxu1 %v2587_v59 }
 0x168   :  { %1294 = vmatprep.subr.mxu0 %v2652_v51  ;;  %1396 = vmatprep.subr.mxu1 %v2575_v10 }
 0x169   :  { %1106 = vmatprep.mubr.f32.mxu0 %v1105_v60  ;;  %1803 = vmatprep.mubr.msk.f32.mxu1 %vm959_vm3, %v2923_v25 }
 0x16a   :  { %1112 = vmatmul.mubr.f32.gmra.mxu0 %v1111_v21  ;;  %1804 = vmatmul.mubr.msk.f32.gmra.mxu1 %vm958_vm4, %v2923_v25 }
 0x16b   :  { %1297 = vmatpush1.xpose.msra.mxu0 %v2677_v31  ;;  %1398 = vmatpush1.xpose.msra.mxu1 %v2580_v45 }
 0x16c   :  { %1400 = vmatprep.subr.mxu1 %v2582_v54  ;;  %1511 = vmatprep.subr.mxu0 %v1143_v29 }
 0x16d   :  { %1805 = vmatprep.mubr.msk.f32.mxu1 %vm961_vm5, %v2923_v25  ;;  %1332 = vmatprep.mubr.f32.mxu0 %v2542_v16 }
 0x16e   :  { %1806 = vmatmul.mubr.msk.f32.gmra.mxu1 %vm960_vm6, %v2923_v25  ;;  %1335 = vmatmul.mubr.f32.vlgmr.msra.gmra.mxu0 %v2590_v44 }
 0x16f   :  { %1402 = vmatpush1.xpose.msra.mxu1 %v2612_v4  ;;  %1515 = vmatpush1.xpose.msra.mxu0 %v1149_v5 }
 0x170   :  { %1404 = vmatprep.subr.mxu1 %v2610_v24  ;;  %1519 = vmatprep.subr.mxu0 %v1155_v7 }
 0x171   :  { %1807 = vmatprep.mubr.msk.f32.mxu1 %vm963_vm7, %v2923_v25  ;;  %1341 = vmatprep.mubr.f32.mxu0 %v2628_v15 }
 0x172   :  { %1808 = vmatmul.mubr.msk.f32.gmra.mxu1 %vm962_vm8, %v2923_v25  ;;  %1344 = vmatmul.mubr.f32.gmra.mxu0 %v2630_v22 }
 0x173   :  { %1406 = vmatpush1.xpose.msra.mxu1 %v2642_v40  ;;  %1523 = vmatpush1.xpose.msra.mxu0 %v1161_v37 }
 0x174   :  { %1527 = vmatprep.subr.mxu0 %v1167_v13  ;;  %1626 = vmatprep.subr.mxu1 %v2603_v42 }
 0x175   :  { %1350 = vmatprep.mubr.f32.mxu0 %v2670_v50  ;;  %1442 = vmatprep.mubr.f32.mxu1 %v2924_v30 }
 0x176   :  { %1353 = vmatmul.mubr.f32.gmra.mxu0 %v2672_v26  ;;  %1446 = vmatmul.mubr.f32.vlgmr.msra.gmra.mxu1 %v1064_v27 }
 0x177   :  { %1531 = vmatpush1.xpose.msra.mxu0 %v1173_v57  ;;  %1628 = vmatpush1.xpose.msra.mxu1 %v2587_v59 }
 0x178   :  { %1535 = vmatprep.subr.mxu0 %v1179_v56  ;;  %1630 = vmatprep.subr.mxu1 %v2575_v10 }
 0x179   :  { %1359 = vmatprep.mubr.f32.mxu0 %v2708_v18  ;;  %1453 = vmatprep.mubr.f32.mxu1 %v1073_v36 }
 0x17a   :  { %1362 = vmatmul.mubr.f32.gmra.mxu0 %v2714_v61  ;;  %1457 = vmatmul.mubr.f32.gmra.mxu1 %v1079_v46 }
 0x17b   :  { %1539 = vmatpush1.xpose.msra.mxu0 %v1185_v41  ;;  %1632 = vmatpush1.xpose.msra.mxu1 %v2580_v45 }
 0x17c   :  { %1634 = vmatprep.subr.mxu1 %v2582_v54  ;;  %1464 = vmatprep.mubr.f32.mxu1 %v1088_v32 }
 0x17d   :  { %1809 = vmatprep.mubr.msk.f32.mxu0 %vm957_vm1, %v2923_v25 }
 0x17e   :  { %1468 = vmatmul.mubr.f32.gmra.mxu1 %v1094_v58  ;;  %1810 = vmatmul.mubr.msk.f32.vlgmr.msra.gmra.mxu0 %vm956_vm2, %v2923_v25 }
 0x17f   :  { %1636 = vmatpush1.xpose.msra.mxu1 %v2612_v4  ;;  %1475 = vmatprep.mubr.f32.mxu1 %v1103_v62 }
 0x180   :  { %1638 = vmatprep.subr.mxu1 %v2610_v24  ;;  %1811 = vmatprep.mubr.msk.f32.mxu0 %vm959_vm3, %v2923_v25 }
 0x182   :  { %1479 = vmatmul.mubr.f32.gmra.mxu1 %v1109_v35  ;;  %1812 = vmatmul.mubr.msk.f32.gmra.mxu0 %vm958_vm4, %v2923_v25  ;;  %v981_v35 = vld [vmem:[#allocation8 + $0x8] sm:$0xff] }
 0x183   :  { %1640 = vmatpush1.xpose.msra.mxu1 %v2642_v40  ;;  %1813 = vmatprep.mubr.msk.f32.mxu0 %vm961_vm5, %v2923_v25 }
 0x184   :  { %1817 = vmatprep.mubr.msk.f32.mxu1 %vm957_vm1, %v2923_v25 }
 0x186   :  { %1814 = vmatmul.mubr.msk.f32.gmra.mxu0 %vm960_vm6, %v2923_v25  ;;  %1818 = vmatmul.mubr.msk.f32.vlgmr.msra.gmra.mxu1 %vm956_vm2, %v2923_v25 }
 0x187   :  { %1815 = vmatprep.mubr.msk.f32.mxu0 %vm963_vm7, %v2923_v25  ;;  %1819 = vmatprep.mubr.msk.f32.mxu1 %vm959_vm3, %v2923_v25 }
 0x18a   :  { %1816 = vmatmul.mubr.msk.f32.gmra.mxu0 %vm962_vm8, %v2923_v25  ;;  %1820 = vmatmul.mubr.msk.f32.gmra.mxu1 %vm958_vm4, %v2923_v25 }
 0x18b   :  { %1821 = vmatprep.mubr.msk.f32.mxu1 %vm961_vm5, %v2923_v25 }
 0x18e   :  { %1822 = vmatmul.mubr.msk.f32.gmra.mxu1 %vm960_vm6, %v2923_v25 }
 0x18f   :  { %1823 = vmatprep.mubr.msk.f32.mxu1 %vm963_vm7, %v2923_v25 }
 0x192   :  { %1824 = vmatmul.mubr.msk.f32.gmra.mxu1 %vm962_vm8, %v2923_v25 }
 0x21e   :  { %v1068_v2 = vpop.f32.mrf.mxu0 }
 0x220   :  { %v1070_v11 = vpop.f32.mrf.mxu0 }
 0x222   :  { %v1083_v12 = vpop.f32.mrf.mxu0 }
 0x224   :  { %v1085_v8 = vpop.f32.mrf.mxu0 }
 0x226   :  { %v1098_v16 = vpop.f32.mrf.mxu0  ;;  %v1225_v9 = vpop.f32.mrf.mxu1 }
 0x227   :  { %v1226_v13 = vadd.f32 %v1225_v9, %v1068_v2  ;;  %v982_v2 = vld [vmem:[#allocation8 + $0x10] sm:$0xff] }
 0x228   :  { %v1100_v20 = vpop.f32.mrf.mxu0  ;;  %v1227_v10 = vpop.f32.mrf.mxu1 }
 0x229   :  { %v983_v10 = vld [vmem:[#allocation8 + $0x18] sm:$0xff] }
 0x22a   :  { %v1113_v45 = vpop.f32.mrf.mxu0  ;;  %v1232_v54 = vpop.f32.mrf.mxu1 }
 0x22b   :  { %v1233_v57 = vadd.f32 %v1232_v54, %v1083_v12 }
 0x22c   :  { %v1115_v59 = vpop.f32.mrf.mxu0  ;;  %v1234_v44 = vpop.f32.mrf.mxu1 }
 0x22e   :  { %v1239_v23 = vpop.f32.mrf.mxu1  ;;  %v1336_v42 = vpop.f32.mrf.mxu0 }
 0x22f   :  { %v1337_v50 = vadd.f32 %v1336_v42, %v1226_v13  ;;  %v1240_v61 = vadd.f32 %v1239_v23, %v1098_v16 }
 0x230   :  { %v1241_v24 = vpop.f32.mrf.mxu1  ;;  %v1338_v4 = vpop.f32.mrf.mxu0 }
 0x232   :  { %v1246_v3 = vpop.f32.mrf.mxu1  ;;  %v1345_v0 = vpop.f32.mrf.mxu0 }
 0x233   :  { %v1346_v52 = vadd.f32 %v1345_v0, %v1233_v57  ;;  %v1247_v48 = vadd.f32 %v1246_v3, %v1113_v45 }
 0x234   :  { %v1248_v5 = vpop.f32.mrf.mxu1  ;;  %v1347_v1 = vpop.f32.mrf.mxu0 }
 0x236   :  { %v1354_v28 = vpop.f32.mrf.mxu0  ;;  %v1447_v7 = vpop.f32.mrf.mxu1 }
 0x237   :  { %v1448_v56 = vadd.f32 %v1447_v7, %v1337_v50  ;;  %v1355_v62 = vadd.f32 %v1354_v28, %v1240_v61 }
 0x238   :  { %v1356_v27 = vpop.f32.mrf.mxu0  ;;  %v1449_v15 = vpop.f32.mrf.mxu1 }
 0x23a   :  { %v1363_v22 = vpop.f32.mrf.mxu0  ;;  %v1458_v29 = vpop.f32.mrf.mxu1 }
 0x23b   :  { %v1459_v6 = vadd.f32 %v1458_v29, %v1346_v52  ;;  %v1364_v25 = vadd.f32 %v1363_v22, %v1247_v48 }
 0x23c   :  { %v1365_v40 = vpop.f32.mrf.mxu0  ;;  %v1460_v53 = vpop.f32.mrf.mxu1 }
 0x23e   :  { %v1469_v37 = vpop.f32.mrf.mxu1  ;;  %v1576_v51 = vpop.f32.mrf.mxu0 }
 0x23f   :  { %v1577_v18 = vadd.f32 %v1576_v51, %v1448_v56  ;;  %v1470_v14 = vadd.f32 %v1469_v37, %v1355_v62 }
 0x240   :  { %v1471_v36 = vpop.f32.mrf.mxu1  ;;  %v1578_v46 = vpop.f32.mrf.mxu0 }
 0x242   :  { %v1480_v26 = vpop.f32.mrf.mxu1  ;;  %v1583_v31 = vpop.f32.mrf.mxu0 }
 0x243   :  { %v1584_v33 = vadd.f32 %v1583_v31, %v1459_v6  ;;  %v1481_v12 = vadd.f32 %v1480_v26, %v1364_v25 }
 0x244   :  { %v1482_v32 = vpop.f32.mrf.mxu1  ;;  %v1585_v41 = vpop.f32.mrf.mxu0 }
 0x246   :  { %v1590_v19 = vpop.f32.mrf.mxu0  ;;  %v1677_v58 = vpop.f32.mrf.mxu1 }
 0x247   :  { %v1678_v34 = vadd.f32 %v1677_v58, %v1577_v18  ;;  %v1591_v21 = vadd.f32 %v1590_v19, %v1470_v14 }
 0x248   :  { %v1592_v43 = vpop.f32.mrf.mxu0  ;;  %v1679_v47 = vpop.f32.mrf.mxu1 }
 0x249   :  { %v1702_v49 = vadd.f32 %v1678_v34, %v980_v38 }
 0x24a   :  { %v1597_v63 = vpop.f32.mrf.mxu0  ;;  %v1684_v39 = vpop.f32.mrf.mxu1 }
 0x24b   :  { %1707 = vst.msk [vmem:[#allocation8] sm:$0xff] %vm56_vm9, %v1702_v49  ;;  %v1685_v17 = vadd.f32 %v1684_v39, %v1584_v33  ;;  %v1598_v9 = vadd.f32 %v1597_v63, %v1481_v12 }
 0x24c   :  { %v1686_v55 = vpop.f32.mrf.mxu1  ;;  %v1599_v60 = vpop.f32.mrf.mxu0 }
 0x24d   :  { %v1703_v30 = vadd.f32 %v1685_v17, %v981_v35 }
 0x24e   :  { %v1691_v11 = vpop.f32.mrf.mxu1 }
 0x24f   :  { %1708 = vst.msk [vmem:[#allocation8 + $0x8] sm:$0xff] %vm56_vm9, %v1703_v30  ;;  %v1692_v8 = vadd.f32 %v1691_v11, %v1591_v21 }
 0x250   :  { %v1693_v16 = vpop.f32.mrf.mxu1 }
 0x251   :  { %v1704_v20 = vadd.f32 %v1692_v8, %v982_v2 }
 0x252   :  { %v1698_v45 = vpop.f32.mrf.mxu1 }
 0x253   :  { %1709 = vst.msk [vmem:[#allocation8 + $0x10] sm:$0xff] %vm56_vm9, %v1704_v20  ;;  %v1699_v54 = vadd.f32 %v1698_v45, %v1598_v9 }
 0x254   :  { %v1700_v59 = vpop.f32.mrf.mxu1 }
 0x255   :  { %v1705_v44 = vadd.f32 %v1699_v54, %v983_v10 }
 0x257   :  { %1710 = vst.msk [vmem:[#allocation8 + $0x18] sm:$0xff] %vm56_vm9, %v1705_v44 }
 0x258   :  { %1904 = shalt.err (!%p1901_p5)
}
 0x259   :  { %1722 = dma.vmem_to_hbm [thread:$0]  %s1717_s2, 512, %s2911_s3, [#allocation4], %s1922_s1, %s1922_s1, %s1923_s25  }
 0x25a   :  { %1917 = dma.done.wait [#allocation4], 512  }
 0x25b   :  { %1918 = vsyncadd [#allocation4], 4294966784 }
 0x25c   :  { %1726 = vsyncpa [#allocation3], 1 }
 0x25d   :  { %1727 = vsyncpa [#allocation6], 1 }
 0x25e   :  { %1728 = vsyncpa [#allocation4], 1 }

</bundles_post_ra>
